<compile_context>
chip_gen: v6e
topology: v6e:2x2x1
jax: 0.10.0
libtpu: 0.0.40
codegen_flags: <defaults>
</compile_context>

<pallas_src>
import jax
import jax.numpy as jnp
from jax import lax
from jax.experimental import pallas as pl
from jax.experimental.pallas import tpu as pltpu

LANE = 128


def _round_up(n, m):
    return ((n + m - 1) // m) * m


def _pick_tile_and_pad(E, tile_e):
    """Large lane-aligned edge tiles; avoid 2-3 step grids (v7x megacore)."""
    tile = min(tile_e, _round_up(E, LANE))
    n_steps = pl.cdiv(E, tile)
    if 1 < n_steps < 4:
        # On v7x (2 TensorCores) a 2-3 step grid gives <2 steps per core, so
        # there is no per-core prefetch/compute overlap; shrink the tile so
        # each core gets >=2 steps.  Costs ~1us of extra step overhead on
        # 1-TC parts (v5e/v6e) only when 2-3 steps would have been used.
        tile = max(LANE, (E // 4) // LANE * LANE)
    E_pad = _round_up(E, tile)
    return tile, E_pad


def _check_in_kernel_gather_fits(n_nodes, in_ch, tile):
    # Resident node table (bf16) + two [N, tile] bf16 one-hots per step must
    # sit comfortably inside the scoped VMEM budget on every generation
    # (v7x: 64 MiB physical / 32 MiB default scoped limit).
    bytes_needed = n_nodes * in_ch * 2 + 2 * n_nodes * tile * 2
    if bytes_needed > 8 * 1024 * 1024:
        # TODO(synk): switch to the paged/DMA-gather variant for large graphs.
        raise ValueError(
            f"node table too large for the VMEM-resident one-hot gather "
            f"(~{bytes_needed} bytes needed per step)")


# ---------------------------------------------------------------------------
# In-kernel helpers
# ---------------------------------------------------------------------------
def _gather_pair(e_ref, xT_ref):
    """One-hot MXU gather of both edge endpoints -> xi, xj as [IN, TE] f32."""
    idx = e_ref[...]                                        # [2, TE] int32
    te = idx.shape[1]
    n_nodes = xT_ref.shape[1]
    node_ids = lax.broadcasted_iota(jnp.int32, (n_nodes, te), 0)
    oh_i = (node_ids == idx[0:1, :]).astype(jnp.bfloat16)   # [N, TE]
    oh_j = (node_ids == idx[1:2, :]).astype(jnp.bfloat16)   # [N, TE]
    xT = xT_ref[...]                                        # [IN, N] bf16
    xi = jnp.dot(xT, oh_i, preferred_element_type=jnp.float32)   # [IN, TE]
    xj = jnp.dot(xT, oh_j, preferred_element_type=jnp.float32)   # [IN, TE]
    return xi, xj


# ---------------------------------------------------------------------------
# Pallas kernels (transposed [channel, edge] layout; edge axis = lanes)
# ---------------------------------------------------------------------------
def _make_mlp_kernel(num_layers):
    """edges [2, TE] + node table -> MLP -> out block [TE, OUT]."""

    def kernel(e_ref, xT_ref, *refs):
        out_ref = refs[-1]
        wb_refs = refs[:-1]
        xi, xj = _gather_pair(e_ref, xT_ref)
        h = (xi * xj).astype(jnp.bfloat16)                  # [IN, TE] bf16
        for l in range(num_layers):
            w = wb_refs[2 * l][...]                         # bf16 [out_l, in_l]
            b = wb_refs[2 * l + 1][...]                     # f32  [out_l, 1]
            acc = jnp.dot(w, h, preferred_element_type=jnp.float32) + b
            if l < num_layers - 1:
                acc = jnp.maximum(acc, 0.0)                 # ReLU (f32 VPU)
                # F.dropout with training=False (eval) is the identity.
                h = acc.astype(jnp.bfloat16)                # bf16 for next MXU pass
            else:
                h = acc                                     # [OUT, TE] f32
        # Per-tile transpose so the output lands directly in [E, OUT] layout.
        out_ref[...] = h.T.astype(out_ref.dtype)            # [TE, OUT]

    return kernel


def _inner_kernel(e_ref, xT_ref, out_ref):
    """'inner' predictor: out[1, TE] = sum_c x[e0,c] * x[e1,c]."""
    xi, xj = _gather_pair(e_ref, xT_ref)
    out_ref[...] = jnp.sum(xi * xj, axis=0, keepdims=True).astype(out_ref.dtype)


# ---------------------------------------------------------------------------
# Wrappers
# ---------------------------------------------------------------------------
def link_predictor_mlp(x, edges, params, *, tile_e=4096):
    """params: tuple of (w, b) with PyTorch layout w: [out, in], b: [out]."""
    E = edges.shape[1]
    N, IN = x.shape
    OUT = params[-1][0].shape[0]
    tile, E_pad = _pick_tile_and_pad(E, tile_e)
    _check_in_kernel_gather_fits(N, IN, tile)

    edges_p = jnp.pad(edges.astype(jnp.int32), ((0, 0), (0, E_pad - E)))
    xT = x.T.astype(jnp.bfloat16)                           # [IN, N] resident

    flat_params = []
    in_specs = [pl.BlockSpec((2, tile), lambda i: (0, i)),   # edge-index block
                pl.BlockSpec((IN, N), lambda i: (0, 0))]     # node table
    for (w, b) in params:
        flat_params += [w.astype(jnp.bfloat16),
                        b.reshape(-1, 1).astype(jnp.float32)]
        in_specs += [pl.BlockSpec(w.shape, lambda i: (0, 0)),
                     pl.BlockSpec((w.shape[0], 1), lambda i: (0, 0))]

    out = pl.pallas_call(
        _make_mlp_kernel(len(params)),
        out_shape=jax.ShapeDtypeStruct((E_pad, OUT), x.dtype),
        grid_spec=pltpu.PrefetchScalarGridSpec(
            num_scalar_prefetch=0,
            grid=(E_pad // tile,),
            in_specs=in_specs,
            out_specs=pl.BlockSpec((tile, OUT), lambda i: (i, 0)),
        ),
        compiler_params=pltpu.CompilerParams(
            dimension_semantics=("parallel",)),
    )(edges_p, xT, *flat_params)

    return out[:E]                                           # [E, OUT]


def link_predictor_inner(x, edges, *, tile_e=4096):
    E = edges.shape[1]
    N, IN = x.shape
    tile, E_pad = _pick_tile_and_pad(E, tile_e)
    _check_in_kernel_gather_fits(N, IN, tile)

    edges_p = jnp.pad(edges.astype(jnp.int32), ((0, 0), (0, E_pad - E)))
    xT = x.T.astype(jnp.bfloat16)                            # [IN, N]

    out = pl.pallas_call(
        _inner_kernel,
        out_shape=jax.ShapeDtypeStruct((1, E_pad), x.dtype),
        grid_spec=pltpu.PrefetchScalarGridSpec(
            num_scalar_prefetch=0,
            grid=(E_pad // tile,),
            in_specs=[pl.BlockSpec((2, tile), lambda i: (0, i)),
                      pl.BlockSpec((IN, N), lambda i: (0, 0))],
            out_specs=pl.BlockSpec((1, tile), lambda i: (0, i)),
        ),
        compiler_params=pltpu.CompilerParams(
            dimension_semantics=("parallel",)),
    )(edges_p, xT)

    return out[0, :E]                                        # [E]


# ---------------------------------------------------------------------------
# Pure-JAX references (module semantics, f32)
# ---------------------------------------------------------------------------
def _ref_mlp(x, edges, params):
    h = x[edges[0]] * x[edges[1]]
    for (w, b) in params[:-1]:
        h = jnp.maximum(h @ w.T + b, 0.0)
    w, b = params[-1]
    return h @ w.T + b


def _ref_inner(x, edges):
    return jnp.sum(x[edges[0]] * x[edges[1]], axis=-1)


# ---------------------------------------------------------------------------
# Main
# ---------------------------------------------------------------------------
if __name__ == "__main__":
    key = jax.random.PRNGKey(0)

    # LinkPredictor(in_channels=32, hidden_channels=64, out_channels=16,
    #               num_layers=3, dropout=0.5), eval mode.  `adj` is unused by
    #               the reference forward.
    N_NODES, IN_CH, HID_CH, OUT_CH = 64, 32, 64, 16
    N_EDGES = 200   # deliberately not a multiple of the tile -> exercises padding

    keys = jax.random.split(key, 9)
    x = jax.random.normal(keys[0], (N_NODES, IN_CH), dtype=jnp.float32)
    edges = jnp.stack([
        jax.random.randint(keys[1], (N_EDGES,), 0, N_NODES),
        jax.random.randint(keys[2], (N_EDGES,), 0, N_NODES),
    ])                                                             # [2, E]

    # PyTorch-layout parameter init: w [out, in], b [out].
    def lin_init(kw, kb, fan_in, fan_out):
        bound = 1.0 / (fan_in ** 0.5)
        w = jax.random.uniform(kw, (fan_out, fan_in), jnp.float32, -bound, bound)
        b = jax.random.uniform(kb, (fan_out,), jnp.float32, -bound, bound)
        return w, b

    params = (
        lin_init(keys[3], keys[4], IN_CH, HID_CH),
        lin_init(keys[5], keys[6], HID_CH, HID_CH),
        lin_init(keys[7], keys[8], HID_CH, OUT_CH),
    )

    # 'mlp' predictor
    out_mlp = jax.block_until_ready(link_predictor_mlp(x, edges, params))
    ref_mlp = _ref_mlp(x, edges, params)
    assert out_mlp.shape == (N_EDGES, OUT_CH), out_mlp.shape
    # bf16 node features + bf16 weights with f32 accumulation -> ~1e-2 abs
    # error worst case; 5e-2 gives wide margin.
    assert jnp.allclose(out_mlp, ref_mlp, atol=5e-2, rtol=5e-2), \
        float(jnp.max(jnp.abs(out_mlp - ref_mlp)))

    # 'inner' predictor
    out_inner = jax.block_until_ready(link_predictor_inner(x, edges))
    ref_inner = _ref_inner(x, edges)
    assert out_inner.shape == (N_EDGES,), out_inner.shape
    assert jnp.allclose(out_inner, ref_inner, atol=1e-1, rtol=5e-2), \
        float(jnp.max(jnp.abs(out_inner - ref_inner)))

    print("KERNEL_OK")
</pallas_src>

<mosaic_0001>
module attributes {stable_mosaic.version = 11 : i64} {
  func.func @kernel(%arg0: i32, %arg1: memref<2x256xi32, #tpu.memory_space<vmem>>, %arg2: memref<32x64xbf16, #tpu.memory_space<vmem>>, %arg3: memref<64x32xbf16, #tpu.memory_space<vmem>>, %arg4: memref<64x1xf32, #tpu.memory_space<vmem>>, %arg5: memref<64x64xbf16, #tpu.memory_space<vmem>>, %arg6: memref<64x1xf32, #tpu.memory_space<vmem>>, %arg7: memref<16x64xbf16, #tpu.memory_space<vmem>>, %arg8: memref<16x1xf32, #tpu.memory_space<vmem>>, %arg9: memref<256x16xf32, #tpu.memory_space<vmem>>) attributes {dimension_semantics = [#tpu.dimension_semantics<parallel>], iteration_bounds = array<i64: 1>, scalar_prefetch = 0 : i64, scratch_operands = 0 : i64, tpu.core_type = #tpu.core_type<tc>, window_params = [{transform_indices = @transform_0, window_bounds = array<i64: 2, 256>}, {pipeline_mode = #tpu.pipeline_mode<synchronous>, transform_indices = @transform_1, window_bounds = array<i64: 32, 64>}, {pipeline_mode = #tpu.pipeline_mode<synchronous>, transform_indices = @transform_2, window_bounds = array<i64: 64, 32>}, {pipeline_mode = #tpu.pipeline_mode<synchronous>, transform_indices = @transform_3, window_bounds = array<i64: 64, 1>}, {pipeline_mode = #tpu.pipeline_mode<synchronous>, transform_indices = @transform_4, window_bounds = array<i64: 64, 64>}, {pipeline_mode = #tpu.pipeline_mode<synchronous>, transform_indices = @transform_5, window_bounds = array<i64: 64, 1>}, {pipeline_mode = #tpu.pipeline_mode<synchronous>, transform_indices = @transform_6, window_bounds = array<i64: 16, 64>}, {pipeline_mode = #tpu.pipeline_mode<synchronous>, transform_indices = @transform_7, window_bounds = array<i64: 16, 1>}, {transform_indices = @transform_8, window_bounds = array<i64: 256, 16>}]} {
    %c0 = arith.constant 0 : index
    %c0_0 = arith.constant 0 : index
    %0 = vector.load %arg1[%c0, %c0_0] : memref<2x256xi32, #tpu.memory_space<vmem>>, vector<2x256xi32>
    %1 = tpu.iota {dimensions = array<i32: 0>} : vector<64x256xi32>
    %2 = vector.extract_strided_slice %0 {offsets = [0, 0], sizes = [1, 256], strides = [1, 1]} : vector<2x256xi32> to vector<1x256xi32>
    %3 = vector.broadcast %2 : vector<1x256xi32> to vector<64x256xi32>
    %4 = arith.cmpi eq, %1, %3 : vector<64x256xi32>
    %5 = arith.extui %4 : vector<64x256xi1> to vector<64x256xi32>
    %6 = arith.sitofp %5 : vector<64x256xi32> to vector<64x256xf32>
    %7 = arith.truncf %6 : vector<64x256xf32> to vector<64x256xbf16>
    %8 = vector.extract_strided_slice %0 {offsets = [1, 0], sizes = [1, 256], strides = [1, 1]} : vector<2x256xi32> to vector<1x256xi32>
    %9 = vector.broadcast %8 : vector<1x256xi32> to vector<64x256xi32>
    %10 = arith.cmpi eq, %1, %9 : vector<64x256xi32>
    %11 = arith.extui %10 : vector<64x256xi1> to vector<64x256xi32>
    %12 = arith.sitofp %11 : vector<64x256xi32> to vector<64x256xf32>
    %13 = arith.truncf %12 : vector<64x256xf32> to vector<64x256xbf16>
    %c0_1 = arith.constant 0 : index
    %c0_2 = arith.constant 0 : index
    %14 = vector.load %arg2[%c0_1, %c0_2] : memref<32x64xbf16, #tpu.memory_space<vmem>>, vector<32x64xbf16>
    %cst = arith.constant dense<0.000000e+00> : vector<32x256xf32>
    %15 = tpu.matmul %14, %7, %cst {dimension_numbers = #tpu.dot_dimension_numbers<[1], [0], [0], [1], [0, 0, 1, 1], [], []>} : vector<32x64xbf16>, vector<64x256xbf16>, vector<32x256xf32> -> vector<32x256xf32>
    %cst_3 = arith.constant dense<0.000000e+00> : vector<32x256xf32>
    %16 = tpu.matmul %14, %13, %cst_3 {dimension_numbers = #tpu.dot_dimension_numbers<[1], [0], [0], [1], [0, 0, 1, 1], [], []>} : vector<32x64xbf16>, vector<64x256xbf16>, vector<32x256xf32> -> vector<32x256xf32>
    %17 = arith.mulf %15, %16 : vector<32x256xf32>
    %18 = arith.truncf %17 : vector<32x256xf32> to vector<32x256xbf16>
    %c0_4 = arith.constant 0 : index
    %c0_5 = arith.constant 0 : index
    %19 = vector.load %arg3[%c0_4, %c0_5] : memref<64x32xbf16, #tpu.memory_space<vmem>>, vector<64x32xbf16>
    %c0_6 = arith.constant 0 : index
    %c0_7 = arith.constant 0 : index
    %20 = vector.load %arg4[%c0_6, %c0_7] : memref<64x1xf32, #tpu.memory_space<vmem>>, vector<64x1xf32>
    %cst_8 = arith.constant dense<0.000000e+00> : vector<64x256xf32>
    %21 = tpu.matmul %19, %18, %cst_8 {dimension_numbers = #tpu.dot_dimension_numbers<[1], [0], [0], [1], [0, 0, 1, 1], [], []>} : vector<64x32xbf16>, vector<32x256xbf16>, vector<64x256xf32> -> vector<64x256xf32>
    %22 = vector.broadcast %20 : vector<64x1xf32> to vector<64x256xf32>
    %23 = arith.addf %21, %22 : vector<64x256xf32>
    %cst_9 = arith.constant 0.000000e+00 : f32
    %24 = vector.broadcast %cst_9 : f32 to vector<64x256xf32>
    %25 = arith.maximumf %23, %24 : vector<64x256xf32>
    %26 = arith.truncf %25 : vector<64x256xf32> to vector<64x256xbf16>
    %c0_10 = arith.constant 0 : index
    %c0_11 = arith.constant 0 : index
    %27 = vector.load %arg5[%c0_10, %c0_11] : memref<64x64xbf16, #tpu.memory_space<vmem>>, vector<64x64xbf16>
    %c0_12 = arith.constant 0 : index
    %c0_13 = arith.constant 0 : index
    %28 = vector.load %arg6[%c0_12, %c0_13] : memref<64x1xf32, #tpu.memory_space<vmem>>, vector<64x1xf32>
    %cst_14 = arith.constant dense<0.000000e+00> : vector<64x256xf32>
    %29 = tpu.matmul %27, %26, %cst_14 {dimension_numbers = #tpu.dot_dimension_numbers<[1], [0], [0], [1], [0, 0, 1, 1], [], []>} : vector<64x64xbf16>, vector<64x256xbf16>, vector<64x256xf32> -> vector<64x256xf32>
    %30 = vector.broadcast %28 : vector<64x1xf32> to vector<64x256xf32>
    %31 = arith.addf %29, %30 : vector<64x256xf32>
    %cst_15 = arith.constant 0.000000e+00 : f32
    %32 = vector.broadcast %cst_15 : f32 to vector<64x256xf32>
    %33 = arith.maximumf %31, %32 : vector<64x256xf32>
    %34 = arith.truncf %33 : vector<64x256xf32> to vector<64x256xbf16>
    %c0_16 = arith.constant 0 : index
    %c0_17 = arith.constant 0 : index
    %35 = vector.load %arg7[%c0_16, %c0_17] : memref<16x64xbf16, #tpu.memory_space<vmem>>, vector<16x64xbf16>
    %c0_18 = arith.constant 0 : index
    %c0_19 = arith.constant 0 : index
    %36 = vector.load %arg8[%c0_18, %c0_19] : memref<16x1xf32, #tpu.memory_space<vmem>>, vector<16x1xf32>
    %cst_20 = arith.constant dense<0.000000e+00> : vector<16x256xf32>
    %37 = tpu.matmul %35, %34, %cst_20 {dimension_numbers = #tpu.dot_dimension_numbers<[1], [0], [0], [1], [0, 0, 1, 1], [], []>} : vector<16x64xbf16>, vector<64x256xbf16>, vector<16x256xf32> -> vector<16x256xf32>
    %38 = vector.broadcast %36 : vector<16x1xf32> to vector<16x256xf32>
    %39 = arith.addf %37, %38 : vector<16x256xf32>
    %40 = tpu.transpose %39, [1, 0] : vector<16x256xf32> -> vector<256x16xf32>
    %c0_21 = arith.constant 0 : index
    %c0_22 = arith.constant 0 : index
    %41 = vector.load %arg9[%c0_21, %c0_22] : memref<256x16xf32, #tpu.memory_space<vmem>>, vector<256x16xf32>
    tpu.vector_store %arg9[%c0_21, %c0_22], %40 {strides = array<i32>} : memref<256x16xf32, #tpu.memory_space<vmem>>, vector<256x16xf32>,
    return
  }
  func.func @transform_0(%arg0: i32) -> (i32, i32) {
    %c0_i32 = arith.constant 0 : i32
    %c0_i32_0 = arith.constant 0 : i32
    return %c0_i32, %arg0 : i32, i32
  }
  func.func @transform_1(%arg0: i32) -> (i32, i32) {
    %c0_i32 = arith.constant 0 : i32
    %c0_i32_0 = arith.constant 0 : i32
    %c0_i32_1 = arith.constant 0 : i32
    return %c0_i32, %c0_i32_0 : i32, i32
  }
  func.func @transform_2(%arg0: i32) -> (i32, i32) {
    %c0_i32 = arith.constant 0 : i32
    %c0_i32_0 = arith.constant 0 : i32
    %c0_i32_1 = arith.constant 0 : i32
    return %c0_i32, %c0_i32_0 : i32, i32
  }
  func.func @transform_3(%arg0: i32) -> (i32, i32) {
    %c0_i32 = arith.constant 0 : i32
    %c0_i32_0 = arith.constant 0 : i32
    %c0_i32_1 = arith.constant 0 : i32
    return %c0_i32, %c0_i32_0 : i32, i32
  }
  func.func @transform_4(%arg0: i32) -> (i32, i32) {
    %c0_i32 = arith.constant 0 : i32
    %c0_i32_0 = arith.constant 0 : i32
    %c0_i32_1 = arith.constant 0 : i32
    return %c0_i32, %c0_i32_0 : i32, i32
  }
  func.func @transform_5(%arg0: i32) -> (i32, i32) {
    %c0_i32 = arith.constant 0 : i32
    %c0_i32_0 = arith.constant 0 : i32
    %c0_i32_1 = arith.constant 0 : i32
    return %c0_i32, %c0_i32_0 : i32, i32
  }
  func.func @transform_6(%arg0: i32) -> (i32, i32) {
    %c0_i32 = arith.constant 0 : i32
    %c0_i32_0 = arith.constant 0 : i32
    %c0_i32_1 = arith.constant 0 : i32
    return %c0_i32, %c0_i32_0 : i32, i32
  }
  func.func @transform_7(%arg0: i32) -> (i32, i32) {
    %c0_i32 = arith.constant 0 : i32
    %c0_i32_0 = arith.constant 0 : i32
    %c0_i32_1 = arith.constant 0 : i32
    return %c0_i32, %c0_i32_0 : i32, i32
  }
  func.func @transform_8(%arg0: i32) -> (i32, i32) {
    %c0_i32 = arith.constant 0 : i32
    %c0_i32_0 = arith.constant 0 : i32
    return %arg0, %c0_i32 : i32, i32
  }
}

</mosaic_0001>

<bundles_post_ra>
// kernel: tpu_custom_call.1
= control target key start
LH: loop header
LB: loop body
LE: loop exit
PB: predicated region body
PF: predicated region fallthrough
CT: control target
= control target key end

     0   :  { %v31_v0 = vlaneseq  ;;  %v964_v1 = vmov 0   ;;  %v965_v20 = vmov 1.0|1.0   ;;  %s1312_s0 = inlined_call_operand.vmem [shape: s32[2,256], index: 0, kind: input, shape index: {}]   ;;  %s1313_s1 = inlined_call_operand.vmem [shape: bf16[32,64], index: 1, kind: input, shape index: {}]   ;;  %s1314_s2 = inlined_call_operand.vmem [shape: bf16[64,32], index: 2, kind: input, shape index: {}]   ;;  %s1315_s3 = inlined_call_operand.vmem [shape: f32[64,1], index: 3, kind: input, shape index: {}]   ;;  %s1316_s5 = inlined_call_operand.vmem [shape: f32[64,1], index: 5, kind: input, shape index: {}]   ;;  %s1317_s7 = inlined_call_operand.vmem [shape: f32[16,1], index: 7, kind: input, shape index: {}]   ;;  %s1318_s4 = inlined_call_operand.vmem [shape: bf16[64,64], index: 4, kind: input, shape index: {}]   ;;  %s1319_s6 = inlined_call_operand.vmem [shape: bf16[16,64], index: 6, kind: input, shape index: {}]   ;;  %s1320_s8 = inlined_call_operand.vmem [shape: f32[256,16], index: 8, kind: output, shape index: {}]  }
   0x1   :  { %237 = vmatprep.mubr.bf16.mxu0 %v964_v1  ;;  %290 = vmatprep.mubr.bf16.mxu1 %v964_v1  ;;  %v30_v3 = vld [vmem:[%s1312_s0] sm:$0xf]  ;;  %v954_v25 = vld [vmem:[%s1313_s1 + $0x8] sm:$0xff]   ;;  %v337_v26 = vld [vmem:[%s1315_s3 + $0x30] sm:$0xff] }
   0x2   :  { %v1013_v2 = vshrl.u32 %v31_v0, 7  ;;  %951 = vset.pattern.permute.xlu0 %v964_v1  ;;  %952 = vset.pattern.permute.xlu1 %v964_v1  ;;  %v953_v24 = vld [vmem:[%s1313_s1] sm:$0xff]   ;;  %v338_v28 = vld [vmem:[%s1315_s3 + $0x38] sm:$0xff]  ;;  %v336_v29 = vld [vmem:[%s1315_s3 + $0x28] sm:$0xff] }
   0x3   :  { %v335_v27 = vld [vmem:[%s1315_s3 + $0x20] sm:$0xff]  ;;  %371 = vperm.xlu0 %951, %v337_v26   ;;  %v333_v30 = vld [vmem:[%s1315_s3 + $0x10] sm:$0xff]  ;;  %v334_v31 = vld [vmem:[%s1315_s3 + $0x18] sm:$0xff] }
   0x4   :  { %v42_v4 = vsub.s32 0, %v1013_v2  ;;  %v46_v5 = vsub.s32 2, %v1013_v2  ;;  %v114_v6 = vsub.s32 1, %v1013_v2  ;;  %v118_v7 = vsub.s32 3, %v1013_v2  ;;  %361 = vperm.xlu1 %952, %v335_v27   ;;  %v331_v32 = vld [vmem:[%s1315_s3] sm:$0xff]  ;;  %v332_v33 = vld [vmem:[%s1315_s3 + $0x8] sm:$0xff] }
   0x5   :  { %v38_v8 = vadd.s32 48, %v1013_v2  ;;  %v39_v9 = vadd.s32 56, %v1013_v2  ;;  %v36_v16 = vadd.s32 32, %v1013_v2  ;;  %v37_v17 = vadd.s32 40, %v1013_v2  ;;  %v523_v34 = vld [vmem:[%s1316_s5 + $0x30] sm:$0xff]  ;;  %v524_v35 = vld [vmem:[%s1316_s5 + $0x38] sm:$0xff] }
   0x6   :  { %v47_v10 = vrot.slane %v30_v3, %v46_v5  ;;  %v43_v11 = vrot.slane %v30_v3, %v42_v4  ;;  %v119_v12 = vrot.slane %v30_v3, %v118_v7  ;;  %v115_v13 = vrot.slane %v30_v3, %v114_v6  ;;  %v521_v36 = vld [vmem:[%s1316_s5 + $0x20] sm:$0xff]  ;;  %v522_v37 = vld [vmem:[%s1316_s5 + $0x28] sm:$0xff]  ;;  %v519_v38 = vld [vmem:[%s1316_s5 + $0x10] sm:$0xff] }
   0x7   :  { %v34_v21 = vadd.s32 16, %v1013_v2  ;;  %v35_v22 = vadd.s32 24, %v1013_v2  ;;  %v33_v23 = vadd.s32 8, %v1013_v2  ;;  %376 = vperm.xlu0 %951, %v338_v28   ;;  %v520_v39 = vld [vmem:[%s1316_s5 + $0x18] sm:$0xff]  ;;  %v517_v40 = vld [vmem:[%s1316_s5] sm:$0xff]  ;;  %v518_v41 = vld [vmem:[%s1316_s5 + $0x8] sm:$0xff] }
   0x8   :  { %v1026_v14 = vrot.slane %v47_v10, %v42_v4  ;;  %v1028_v15 = vrot.slane %v43_v11, %v42_v4  ;;  %v1032_v18 = vrot.slane %v119_v12, %v114_v6  ;;  %v1034_v19 = vrot.slane %v115_v13, %v114_v6  ;;  %366 = vperm.xlu1 %952, %v336_v29   ;;  %v696_v42 = vld [vmem:[%s1317_s7] sm:$0xff]  ;;  %v697_v43 = vld [vmem:[%s1317_s7 + $0x8] sm:$0xff]  ;;  %v957_v11 = vld [vmem:[%s1314_s2 + $0x10] sm:$0xff]  }
   0x9   :  { %v956_v10 = vld [vmem:[%s1314_s2 + $0x8] sm:$0xff]   ;;  %v958_v12 = vld [vmem:[%s1314_s2 + $0x18] sm:$0xff]  }
   0xa   :  { %vm69_vm0 = vcmp.eq.s32.totalorder %v38_v8, %v1026_v14  ;;  %vm71_vm1 = vcmp.eq.s32.totalorder %v39_v9, %v1026_v14  ;;  %vm68_vm2 = vcmp.eq.s32.totalorder %v38_v8, %v1028_v15  ;;  %vm70_vm3 = vcmp.eq.s32.totalorder %v39_v9, %v1028_v15 }
   0xb   :  { %vm894_vm4 = vmpackc.low %vm71_vm1, %vm69_vm0  ;;  %vm141_vm5 = vcmp.eq.s32.totalorder %v38_v8, %v1032_v18  ;;  %vm143_vm6 = vcmp.eq.s32.totalorder %v39_v9, %v1032_v18  ;;  %vm140_vm7 = vcmp.eq.s32.totalorder %v38_v8, %v1034_v19  ;;  %vm142_vm8 = vcmp.eq.s32.totalorder %v39_v9, %v1034_v19  ;;  %351 = vperm.xlu0 %951, %v333_v30   ;;  %v955_v9 = vld [vmem:[%s1314_s2] sm:$0xff]  }
   0xc   :  { %895 = vmatprep.subr.msk.bf16.mxu0 %vm894_vm4, %v965_v20  ;;  %vm912_vm9 = vmpackc.low %vm143_vm6, %vm141_vm5  ;;  %vm65_vm10 = vcmp.eq.s32.totalorder %v36_v16, %v1026_v14  ;;  %vm67_vm11 = vcmp.eq.s32.totalorder %v37_v17, %v1026_v14  ;;  %vm137_vm13 = vcmp.eq.s32.totalorder %v36_v16, %v1032_v18  ;;  %vm139_vm14 = vcmp.eq.s32.totalorder %v37_v17, %v1032_v18 }
   0xd   :  { %913 = vmatprep.subr.msk.bf16.mxu1 %vm912_vm9, %v965_v20  ;;  %vm896_vm12 = vmpackc.low %vm70_vm3, %vm68_vm2  ;;  %vm64_vm0 = vcmp.eq.s32.totalorder %v36_v16, %v1028_v15  ;;  %vm66_vm1 = vcmp.eq.s32.totalorder %v37_v17, %v1028_v15  ;;  %vm136_vm5 = vcmp.eq.s32.totalorder %v36_v16, %v1034_v19  ;;  %vm138_vm6 = vcmp.eq.s32.totalorder %v37_v17, %v1034_v19 }
   0xe   :  { %897 = vmatpush1.bf16.msk.msra.mxu0 %vm896_vm12, %v965_v20  ;;  %vm914_vm15 = vmpackc.low %vm142_vm8, %vm140_vm7  ;;  %vm61_vm2 = vcmp.eq.s32.totalorder %v34_v21, %v1026_v14  ;;  %vm63_vm3 = vcmp.eq.s32.totalorder %v35_v22, %v1026_v14  ;;  %vm133_vm8 = vcmp.eq.s32.totalorder %v34_v21, %v1032_v18  ;;  %vm135_vm12 = vcmp.eq.s32.totalorder %v35_v22, %v1032_v18 }
   0xf   :  { %915 = vmatpush1.bf16.msk.msra.mxu1 %vm914_vm15, %v965_v20  ;;  %vm898_vm4 = vmpackc.low %vm67_vm11, %vm65_vm10  ;;  %vm60_vm11 = vcmp.eq.s32.totalorder %v34_v21, %v1028_v15  ;;  %vm62_vm15 = vcmp.eq.s32.totalorder %v35_v22, %v1028_v15  ;;  %356 = vperm.xlu1 %952, %v334_v31  }
  0x10   :  { %899 = vmatprep.subr.msk.bf16.mxu0 %vm898_vm4, %v965_v20  ;;  %vm916_vm9 = vmpackc.low %vm139_vm14, %vm137_vm13  ;;  %vm132_vm14 = vcmp.eq.s32.totalorder %v34_v21, %v1034_v19  ;;  %vm134_vm4 = vcmp.eq.s32.totalorder %v35_v22, %v1034_v19  ;;  %341 = vperm.xlu0 %951, %v331_v32  }
  0x11   :  { %917 = vmatprep.subr.msk.bf16.mxu1 %vm916_vm9, %v965_v20  ;;  %vm900_vm7 = vmpackc.low %vm66_vm1, %vm64_vm0  ;;  %vm57_vm0 = vcmp.eq.s32.totalorder %v1013_v2, %v1026_v14  ;;  %vm59_vm1 = vcmp.eq.s32.totalorder %v33_v23, %v1026_v14 }
  0x12   :  { %901 = vmatpush1.bf16.msk.msra.mxu0 %vm900_vm7, %v965_v20  ;;  %vm918_vm10 = vmpackc.low %vm138_vm6, %vm136_vm5  ;;  %vm129_vm5 = vcmp.eq.s32.totalorder %v1013_v2, %v1032_v18  ;;  %vm131_vm6 = vcmp.eq.s32.totalorder %v33_v23, %v1032_v18 }
  0x13   :  { %919 = vmatpush1.bf16.msk.msra.mxu1 %vm918_vm10, %v965_v20  ;;  %vm902_vm13 = vmpackc.low %vm63_vm3, %vm61_vm2  ;;  %vm56_vm3 = vcmp.eq.s32.totalorder %v1013_v2, %v1028_v15  ;;  %vm58_vm10 = vcmp.eq.s32.totalorder %v33_v23, %v1028_v15  ;;  %346 = vperm.xlu1 %952, %v332_v33  }
  0x14   :  { %903 = vmatprep.subr.msk.bf16.mxu0 %vm902_vm13, %v965_v20  ;;  %vm920_vm9 = vmpackc.low %vm135_vm12, %vm133_vm8  ;;  %vm128_vm12 = vcmp.eq.s32.totalorder %v1013_v2, %v1034_v19  ;;  %vm130_vm13 = vcmp.eq.s32.totalorder %v33_v23, %v1034_v19  ;;  %557 = vperm.xlu0 %951, %v523_v34  }
  0x15   :  { %921 = vmatprep.subr.msk.bf16.mxu1 %vm920_vm9, %v965_v20  ;;  %vm904_vm7 = vmpackc.low %vm62_vm15, %vm60_vm11  ;;  %vm399_vm9 = vcmask 261120  }
  0x16   :  { %905 = vmatpush1.bf16.msk.msra.mxu0 %vm904_vm7, %v965_v20  ;;  %vm922_vm2 = vmpackc.low %vm134_vm4, %vm132_vm14  ;;  %vm198_vm4 = vcmask 523264  }
  0x17   :  { %923 = vmatpush1.bf16.msk.msra.mxu1 %vm922_vm2, %v965_v20  ;;  %vm906_vm8 = vmpackc.low %vm59_vm1, %vm57_vm0  ;;  %562 = vperm.xlu1 %952, %v524_v35   ;;  %vm823_vm0 = vcmask 130048  }
  0x18   :  { %907 = vmatprep.subr.msk.bf16.mxu0 %vm906_vm8, %v965_v20  ;;  %vm924_vm11 = vmpackc.low %vm131_vm6, %vm129_vm5  ;;  %547 = vperm.xlu0 %951, %v521_v36  }
  0x19   :  { %925 = vmatprep.subr.msk.bf16.mxu1 %vm924_vm11, %v965_v20  ;;  %vm908_vm15 = vmpackc.low %vm58_vm10, %vm56_vm3 }
  0x1a   :  { %909 = vmatpush1.bf16.msk.msra.mxu0 %vm908_vm15, %v965_v20  ;;  %vm926_vm14 = vmpackc.low %vm130_vm13, %vm128_vm12 }
  0x1b   :  { %927 = vmatpush1.bf16.msk.msra.mxu1 %vm926_vm14, %v965_v20  ;;  %552 = vperm.xlu1 %952, %v522_v37  }
  0x1c   :  { %537 = vperm.xlu0 %951, %v519_v38  }
  0x1d   :  { %910 = vmatmul.mubr.msk.bf16.vlgmr.msra.gmra.mxu0 %vm198_vm4, %v953_v24 }
  0x1e   :  { %928 = vmatmul.mubr.msk.bf16.vlgmr.msra.gmra.mxu1 %vm198_vm4, %v953_v24  ;;  %247 = vmatprep.mubr.bf16.mxu0 %v964_v1 }
  0x1f   :  { %300 = vmatprep.mubr.bf16.mxu1 %v964_v1  ;;  %542 = vperm.xlu1 %952, %v520_v39  }
  0x20   :  { %527 = vperm.xlu0 %951, %v517_v40  }
  0x23   :  { %532 = vperm.xlu1 %952, %v518_v41  }
  0x24   :  { %700 = vperm.xlu0 %951, %v696_v42  }
  0x25   :  { %911 = vmatmul.mubr.msk.bf16.gmra.mxu0 %vm198_vm4, %v954_v25 }
  0x26   :  { %929 = vmatmul.mubr.msk.bf16.gmra.mxu1 %vm198_vm4, %v954_v25  ;;  %444 = vmatprep.mubr.bf16.mxu0 %v964_v1 }
  0x27   :  { %629 = vmatprep.mubr.bf16.mxu1 %v964_v1  ;;  %705 = vperm.xlu1 %952, %v697_v43  }
  0x7e   :  { %v372_v24 = vpop.permute.xlu0 %371 }
  0x7f   :  { %v362_v22 = vpop.permute.xlu1 %361 }
  0x82   :  { %v377_v29 = vpop.permute.xlu0 %376 }
  0x83   :  { %v367_v27 = vpop.permute.xlu1 %366 }
  0x86   :  { %v352_v40 = vpop.permute.xlu0 %351 }
  0x8a   :  { %v357_v35 = vpop.permute.xlu1 %356 }
  0xdd   :  { %v239_v44 = vpop.f32.mrf.mxu0 }
  0xde   :  { %v292_v45 = vpop.f32.mrf.mxu1 }
  0xdf   :  { %v241_v46 = vpop.f32.mrf.mxu0  ;;  %v311_v7 = vmul.f32 %v292_v45, %v239_v44 }
  0xe0   :  { %v294_v47 = vpop.f32.mrf.mxu1 }
  0xe1   :  { %v243_v48 = vpop.f32.mrf.mxu0  ;;  %v312_v2 = vmul.f32 %v294_v47, %v241_v46 }
  0xe2   :  { %v296_v49 = vpop.f32.mrf.mxu1 }
  0xe3   :  { %v245_v50 = vpop.f32.mrf.mxu0  ;;  %v313_v4 = vmul.f32 %v296_v49, %v243_v48 }
  0xe4   :  { %v298_v51 = vpop.f32.mrf.mxu1 }
  0xe5   :  { %v249_v52 = vpop.f32.mrf.mxu0  ;;  %v314_v61 = vmul.f32 %v298_v51, %v245_v50  ;;  %v319_v8 = vpack.c.bf16 %v313_v4, %v311_v7 }
  0xe6   :  { %v302_v53 = vpop.f32.mrf.mxu1 }
  0xe7   :  { %v251_v54 = vpop.f32.mrf.mxu0  ;;  %v315_v0 = vmul.f32 %v302_v53, %v249_v52  ;;  %v320_v6 = vpack.c.bf16 %v314_v61, %v312_v2  ;;  %v347_v52 = vpop.permute.xlu1 %346 }
  0xe8   :  { %v304_v55 = vpop.f32.mrf.mxu1 }
  0xe9   :  { %v253_v56 = vpop.f32.mrf.mxu0  ;;  %v316_v62 = vmul.f32 %v304_v55, %v251_v54 }
  0xea   :  { %v306_v57 = vpop.f32.mrf.mxu1 }
  0xeb   :  { %v255_v58 = vpop.f32.mrf.mxu0  ;;  %v317_v59 = vmul.f32 %v306_v57, %v253_v56 }
  0xec   :  { %v308_v60 = vpop.f32.mrf.mxu1 }
  0xed   :  { %v318_v63 = vmul.f32 %v308_v60, %v255_v58  ;;  %v321_v5 = vpack.c.bf16 %v317_v59, %v315_v0  ;;  %v342_v59 = vpop.permute.xlu0 %341 }
  0xef   :  { %v322_v3 = vpack.c.bf16 %v318_v63, %v316_v62 }
  0xf1   :  { %424 = vmatprep.subr.bf16.mxu0 %v322_v3 }
  0xf2   :  { %425 = vmatpush1.bf16.msra.mxu0 %v321_v5 }
  0xf3   :  { %426 = vmatprep.subr.bf16.mxu0 %v320_v6 }
  0xf6   :  { %427 = vmatpush1.bf16.msra.mxu0 %v319_v8 }
  0xf9   :  { %934 = vmatmul.mubr.msk.bf16.vlgmr.msra.gmra.mxu0 %vm399_vm9, %v955_v9 }
  0xfa   :  { %454 = vmatprep.mubr.bf16.mxu0 %v964_v1 }
 0x101   :  { %935 = vmatmul.mubr.msk.bf16.gmra.mxu0 %vm399_vm9, %v956_v10 }
 0x102   :  { %464 = vmatprep.mubr.bf16.mxu0 %v964_v1 }
 0x109   :  { %936 = vmatmul.mubr.msk.bf16.gmra.mxu0 %vm399_vm9, %v957_v11 }
 0x10a   :  { %474 = vmatprep.mubr.bf16.mxu0 %v964_v1 }
 0x111   :  { %937 = vmatmul.mubr.msk.bf16.gmra.mxu0 %vm399_vm9, %v958_v12 }
 0x112   :  { %748 = vmatprep.mubr.bf16.mxu0 %v964_v1 }
 0x1b9   :  { %v446_v13 = vpop.f32.mrf.mxu0 }
 0x1ba   :  { %v447_v6 = vadd.f32 %v446_v13, %v342_v59  ;;  %v960_v13 = vld [vmem:[%s1318_s4 + $0x8] sm:$0xff]  }
 0x1bb   :  { %v448_v14 = vpop.f32.mrf.mxu0 }
 0x1bc   :  { %v449_v62 = vadd.f32 %v448_v14, %v342_v59  ;;  %v485_v12 = vmax.f32 %v447_v6, 0.0  ;;  %v959_v14 = vld [vmem:[%s1318_s4] sm:$0xff]  }
 0x1bd   :  { %v450_v15 = vpop.f32.mrf.mxu0 }
 0x1be   :  { %v451_v0 = vadd.f32 %v450_v15, %v347_v52  ;;  %v486_v8 = vmax.f32 %v449_v62, 0.0  ;;  %v961_v15 = vld [vmem:[%s1318_s4 + $0x10] sm:$0xff]  }
 0x1bf   :  { %v452_v16 = vpop.f32.mrf.mxu0 }
 0x1c0   :  { %v453_v56 = vadd.f32 %v452_v16, %v347_v52  ;;  %v487_v9 = vmax.f32 %v451_v0, 0.0 }
 0x1c1   :  { %v456_v17 = vpop.f32.mrf.mxu0 }
 0x1c2   :  { %v457_v60 = vadd.f32 %v456_v17, %v352_v40  ;;  %v488_v4 = vmax.f32 %v453_v56, 0.0  ;;  %v501_v16 = vpack.c.bf16 %v487_v9, %v485_v12  ;;  %v962_v17 = vld [vmem:[%s1318_s4 + $0x18] sm:$0xff]  }
 0x1c3   :  { %v458_v18 = vpop.f32.mrf.mxu0 }
 0x1c4   :  { %v459_v49 = vadd.f32 %v458_v18, %v352_v40  ;;  %v489_v7 = vmax.f32 %v457_v60, 0.0  ;;  %v502_v11 = vpack.c.bf16 %v488_v4, %v486_v8 }
 0x1c5   :  { %v460_v19 = vpop.f32.mrf.mxu0 }
 0x1c6   :  { %v461_v53 = vadd.f32 %v460_v19, %v357_v35  ;;  %v490_v63 = vmax.f32 %v459_v49, 0.0 }
 0x1c7   :  { %v462_v20 = vpop.f32.mrf.mxu0 }
 0x1c8   :  { %v463_v43 = vadd.f32 %v462_v20, %v357_v35  ;;  %v491_v2 = vmax.f32 %v461_v53, 0.0 }
 0x1c9   :  { %v466_v21 = vpop.f32.mrf.mxu0 }
 0x1ca   :  { %v467_v47 = vadd.f32 %v466_v21, %v362_v22  ;;  %v492_v57 = vmax.f32 %v463_v43, 0.0  ;;  %v503_v10 = vpack.c.bf16 %v491_v2, %v489_v7 }
 0x1cb   :  { %v468_v23 = vpop.f32.mrf.mxu0 }
 0x1cc   :  { %v469_v38 = vadd.f32 %v468_v23, %v362_v22  ;;  %v493_v61 = vmax.f32 %v467_v47, 0.0  ;;  %v504_v5 = vpack.c.bf16 %v492_v57, %v490_v63 }
 0x1cd   :  { %v470_v25 = vpop.f32.mrf.mxu0 }
 0x1ce   :  { %v471_v41 = vadd.f32 %v470_v25, %v367_v27  ;;  %v494_v50 = vmax.f32 %v469_v38, 0.0 }
 0x1cf   :  { %v472_v26 = vpop.f32.mrf.mxu0 }
 0x1d0   :  { %v473_v32 = vadd.f32 %v472_v26, %v367_v27  ;;  %v495_v54 = vmax.f32 %v471_v41, 0.0  ;;  %v563_v27 = vpop.permute.xlu1 %562 }
 0x1d1   :  { %v476_v28 = vpop.f32.mrf.mxu0 }
 0x1d2   :  { %v477_v36 = vadd.f32 %v476_v28, %v372_v24  ;;  %v496_v44 = vmax.f32 %v473_v32, 0.0  ;;  %v505_v3 = vpack.c.bf16 %v495_v54, %v493_v61 }
 0x1d3   :  { %v478_v30 = vpop.f32.mrf.mxu0 }
 0x1d4   :  { %v479_v33 = vadd.f32 %v478_v30, %v372_v24  ;;  %v497_v48 = vmax.f32 %v477_v36, 0.0  ;;  %v506_v58 = vpack.c.bf16 %v496_v44, %v494_v50 }
 0x1d5   :  { %v480_v31 = vpop.f32.mrf.mxu0 }
 0x1d6   :  { %v481_v34 = vadd.f32 %v480_v31, %v377_v29  ;;  %v498_v45 = vmax.f32 %v479_v33, 0.0  ;;  %v553_v31 = vpop.permute.xlu1 %552 }
 0x1d7   :  { %v482_v37 = vpop.f32.mrf.mxu0 }
 0x1d8   :  { %v483_v39 = vadd.f32 %v482_v37, %v377_v29  ;;  %v499_v42 = vmax.f32 %v481_v34, 0.0  ;;  %v558_v29 = vpop.permute.xlu0 %557 }
 0x1da   :  { %v500_v46 = vmax.f32 %v483_v39, 0.0  ;;  %v507_v55 = vpack.c.bf16 %v499_v42, %v497_v48  ;;  %v543_v39 = vpop.permute.xlu1 %542 }
 0x1dc   :  { %v508_v51 = vpack.c.bf16 %v500_v46, %v498_v45  ;;  %v548_v33 = vpop.permute.xlu0 %547 }
 0x1de   :  { %605 = vmatprep.subr.bf16.mxu1 %v508_v51  ;;  %v533_v56 = vpop.permute.xlu1 %532 }
 0x1df   :  { %606 = vmatpush1.bf16.msra.mxu1 %v507_v55 }
 0x1e0   :  { %607 = vmatprep.subr.bf16.mxu1 %v506_v58  ;;  %v538_v44 = vpop.permute.xlu0 %537 }
 0x1e3   :  { %608 = vmatpush1.bf16.msra.mxu1 %v505_v3 }
 0x1e4   :  { %609 = vmatprep.subr.bf16.mxu1 %v504_v5  ;;  %v528_v63 = vpop.permute.xlu0 %527 }
 0x1e7   :  { %610 = vmatpush1.bf16.msra.mxu1 %v503_v10 }
 0x1e8   :  { %611 = vmatprep.subr.bf16.mxu1 %v502_v11 }
 0x1eb   :  { %612 = vmatpush1.bf16.msra.mxu1 %v501_v16 }
 0x1ee   :  { %942 = vmatmul.mubr.msk.bf16.vlgmr.msra.gmra.mxu1 %vm198_vm4, %v959_v14 }
 0x1ef   :  { %639 = vmatprep.mubr.bf16.mxu1 %v964_v1 }
 0x1f6   :  { %943 = vmatmul.mubr.msk.bf16.gmra.mxu1 %vm198_vm4, %v960_v13 }
 0x1f7   :  { %649 = vmatprep.mubr.bf16.mxu1 %v964_v1 }
 0x1fe   :  { %944 = vmatmul.mubr.msk.bf16.gmra.mxu1 %vm198_vm4, %v961_v15 }
 0x1ff   :  { %659 = vmatprep.mubr.bf16.mxu1 %v964_v1 }
 0x206   :  { %945 = vmatmul.mubr.msk.bf16.gmra.mxu1 %vm198_vm4, %v962_v17 }
 0x2ae   :  { %v631_v18 = vpop.f32.mrf.mxu1 }
 0x2af   :  { %v632_v10 = vadd.f32 %v631_v18, %v528_v63 }
 0x2b0   :  { %v633_v19 = vpop.f32.mrf.mxu1 }
 0x2b1   :  { %v634_v3 = vadd.f32 %v633_v19, %v528_v63  ;;  %v670_v15 = vmax.f32 %v632_v10, 0.0  ;;  %v963_v19 = vld [vmem:[%s1319_s6] sm:$0xff]  }
 0x2b2   :  { %v635_v20 = vpop.f32.mrf.mxu1 }
 0x2b3   :  { %v636_v5 = vadd.f32 %v635_v20, %v533_v56  ;;  %v671_v12 = vmax.f32 %v634_v3, 0.0  ;;  %v701_v20 = vpop.permute.xlu0 %700 }
 0x2b4   :  { %v637_v21 = vpop.f32.mrf.mxu1 }
 0x2b5   :  { %v638_v60 = vadd.f32 %v637_v21, %v533_v56  ;;  %v672_v16 = vmax.f32 %v636_v5, 0.0 }
 0x2b6   :  { %v641_v22 = vpop.f32.mrf.mxu1 }
 0x2b7   :  { %v642_v0 = vadd.f32 %v641_v22, %v538_v44  ;;  %v673_v8 = vmax.f32 %v638_v60, 0.0  ;;  %v686_v17 = vpack.c.bf16 %v672_v16, %v670_v15 }
 0x2b8   :  { %v643_v23 = vpop.f32.mrf.mxu1 }
 0x2b9   :  { %v644_v53 = vadd.f32 %v643_v23, %v538_v44  ;;  %v674_v11 = vmax.f32 %v642_v0, 0.0  ;;  %v687_v13 = vpack.c.bf16 %v673_v8, %v671_v12 }
 0x2ba   :  { %v645_v24 = vpop.f32.mrf.mxu1 }
 0x2bb   :  { %v646_v57 = vadd.f32 %v645_v24, %v543_v39  ;;  %v675_v4 = vmax.f32 %v644_v53, 0.0  ;;  %v706_v24 = vpop.permute.xlu1 %705 }
 0x2bc   :  { %v647_v25 = vpop.f32.mrf.mxu1 }
 0x2bd   :  { %v648_v47 = vadd.f32 %v647_v25, %v543_v39  ;;  %v676_v6 = vmax.f32 %v646_v57, 0.0 }
 0x2be   :  { %v651_v26 = vpop.f32.mrf.mxu1 }
 0x2bf   :  { %v652_v51 = vadd.f32 %v651_v26, %v548_v33  ;;  %v677_v61 = vmax.f32 %v648_v47, 0.0  ;;  %v688_v14 = vpack.c.bf16 %v676_v6, %v674_v11 }
 0x2c0   :  { %v653_v28 = vpop.f32.mrf.mxu1 }
 0x2c1   :  { %v654_v42 = vadd.f32 %v653_v28, %v548_v33  ;;  %v678_v2 = vmax.f32 %v652_v51, 0.0  ;;  %v689_v9 = vpack.c.bf16 %v677_v61, %v675_v4 }
 0x2c2   :  { %v655_v30 = vpop.f32.mrf.mxu1 }
 0x2c3   :  { %v656_v45 = vadd.f32 %v655_v30, %v553_v31  ;;  %v679_v54 = vmax.f32 %v654_v42, 0.0 }
 0x2c4   :  { %v657_v1 = vpop.f32.mrf.mxu1 }
 0x2c5   :  { %v658_v36 = vadd.f32 %v657_v1, %v553_v31  ;;  %v680_v58 = vmax.f32 %v656_v45, 0.0 }
 0x2c6   :  { %v661_v32 = vpop.f32.mrf.mxu1 }
 0x2c7   :  { %v662_v40 = vadd.f32 %v661_v32, %v558_v29  ;;  %v681_v48 = vmax.f32 %v658_v36, 0.0  ;;  %v690_v7 = vpack.c.bf16 %v680_v58, %v678_v2 }
 0x2c8   :  { %v663_v34 = vpop.f32.mrf.mxu1 }
 0x2c9   :  { %v664_v37 = vadd.f32 %v663_v34, %v558_v29  ;;  %v682_v52 = vmax.f32 %v662_v40, 0.0  ;;  %v691_v62 = vpack.c.bf16 %v681_v48, %v679_v54 }
 0x2ca   :  { %v665_v35 = vpop.f32.mrf.mxu1 }
 0x2cb   :  { %v666_v38 = vadd.f32 %v665_v35, %v563_v27  ;;  %v683_v49 = vmax.f32 %v664_v37, 0.0 }
 0x2cc   :  { %v667_v41 = vpop.f32.mrf.mxu1 }
 0x2cd   :  { %v668_v43 = vadd.f32 %v667_v41, %v563_v27  ;;  %v684_v46 = vmax.f32 %v666_v38, 0.0 }
 0x2cf   :  { %v685_v50 = vmax.f32 %v668_v43, 0.0  ;;  %v692_v59 = vpack.c.bf16 %v684_v46, %v682_v52 }
 0x2d1   :  { %v693_v55 = vpack.c.bf16 %v685_v50, %v683_v49 }
 0x2d3   :  { %724 = vmatprep.subr.bf16.mxu0 %v693_v55 }
 0x2d4   :  { %725 = vmatpush1.bf16.msra.mxu0 %v692_v59 }
 0x2d5   :  { %726 = vmatprep.subr.bf16.mxu0 %v691_v62 }
 0x2d8   :  { %727 = vmatpush1.bf16.msra.mxu0 %v690_v7 }
 0x2d9   :  { %728 = vmatprep.subr.bf16.mxu0 %v689_v9 }
 0x2dc   :  { %729 = vmatpush1.bf16.msra.mxu0 %v688_v14 }
 0x2dd   :  { %730 = vmatprep.subr.bf16.mxu0 %v687_v13 }
 0x2e0   :  { %731 = vmatpush1.bf16.msra.mxu0 %v686_v17 }
 0x2e3   :  { %947 = vmatmul.mubr.msk.bf16.vlgmr.msra.gmra.mxu0 %vm198_vm4, %v963_v19 }
 0x3a3   :  { %v750_v18 = vpop.f32.mrf.mxu0 }
 0x3a4   :  { %v751_v21 = vadd.f32 %v750_v18, %v701_v20 }
 0x3a5   :  { %v752_v22 = vpop.f32.mrf.mxu0 }
 0x3a6   :  { %v753_v23 = vadd.f32 %v752_v22, %v701_v20  ;;  %759 = vxpose.xlu0.b32.start [1/2] (short) %v751_v21, 128 }
 0x3a7   :  { %v754_v25 = vpop.f32.mrf.mxu0 }
 0x3a8   :  { %v755_v26 = vadd.f32 %v754_v25, %v706_v24  ;;  %791 = vxpose.xlu1.b32.start [1/2] (short) %v753_v23, 128 }
 0x3a9   :  { %v756_v27 = vpop.f32.mrf.mxu0 }
 0x3aa   :  { %v757_v28 = vadd.f32 %v756_v27, %v706_v24  ;;  %760 = vxpose.xlu0.b32.end [2/2] (short) %v755_v26, 128 }
 0x3ac   :  { %792 = vxpose.xlu1.b32.end [2/2] (short) %v757_v28, 128 }
 0x422   :  { %v775_v29 = vpop.trf.xlu0 }
 0x423   :  { %824 = vst.msk [vmem:[%s1320_s8] sm:$0xff] %vm823_vm0, %v775_v29 }
 0x424   :  { %v807_v30 = vpop.trf.xlu1 }
 0x425   :  { %840 = vst.msk [vmem:[%s1320_s8 + $0x80] sm:$0xff] %vm823_vm0, %v807_v30 }
 0x426   :  { %v776_v1 = vpop.trf.xlu0 }
 0x427   :  { %825 = vst.msk [vmem:[%s1320_s8 + $0x8] sm:$0xff] %vm823_vm0, %v776_v1 }
 0x428   :  { %v808_v31 = vpop.trf.xlu1 }
 0x429   :  { %841 = vst.msk [vmem:[%s1320_s8 + $0x88] sm:$0xff] %vm823_vm0, %v808_v31 }
 0x42a   :  { %v777_v32 = vpop.trf.xlu0 }
 0x42b   :  { %826 = vst.msk [vmem:[%s1320_s8 + $0x10] sm:$0xff] %vm823_vm0, %v777_v32 }
 0x42c   :  { %v809_v33 = vpop.trf.xlu1 }
 0x42d   :  { %842 = vst.msk [vmem:[%s1320_s8 + $0x90] sm:$0xff] %vm823_vm0, %v809_v33 }
 0x42e   :  { %v778_v34 = vpop.trf.xlu0 }
 0x42f   :  { %827 = vst.msk [vmem:[%s1320_s8 + $0x18] sm:$0xff] %vm823_vm0, %v778_v34 }
 0x430   :  { %v810_v35 = vpop.trf.xlu1 }
 0x431   :  { %843 = vst.msk [vmem:[%s1320_s8 + $0x98] sm:$0xff] %vm823_vm0, %v810_v35 }
 0x432   :  { %v779_v36 = vpop.trf.xlu0 }
 0x433   :  { %828 = vst.msk [vmem:[%s1320_s8 + $0x20] sm:$0xff] %vm823_vm0, %v779_v36 }
 0x434   :  { %v811_v37 = vpop.trf.xlu1 }
 0x435   :  { %844 = vst.msk [vmem:[%s1320_s8 + $0xa0] sm:$0xff] %vm823_vm0, %v811_v37 }
 0x436   :  { %v780_v38 = vpop.trf.xlu0 }
 0x437   :  { %829 = vst.msk [vmem:[%s1320_s8 + $0x28] sm:$0xff] %vm823_vm0, %v780_v38 }
 0x438   :  { %v812_v39 = vpop.trf.xlu1 }
 0x439   :  { %845 = vst.msk [vmem:[%s1320_s8 + $0xa8] sm:$0xff] %vm823_vm0, %v812_v39 }
 0x43a   :  { %v781_v40 = vpop.trf.xlu0 }
 0x43b   :  { %830 = vst.msk [vmem:[%s1320_s8 + $0x30] sm:$0xff] %vm823_vm0, %v781_v40 }
 0x43c   :  { %v813_v41 = vpop.trf.xlu1 }
 0x43d   :  { %846 = vst.msk [vmem:[%s1320_s8 + $0xb0] sm:$0xff] %vm823_vm0, %v813_v41 }
 0x43e   :  { %v782_v42 = vpop.trf.xlu0 }
 0x43f   :  { %831 = vst.msk [vmem:[%s1320_s8 + $0x38] sm:$0xff] %vm823_vm0, %v782_v42 }
 0x440   :  { %v814_v43 = vpop.trf.xlu1 }
 0x441   :  { %847 = vst.msk [vmem:[%s1320_s8 + $0xb8] sm:$0xff] %vm823_vm0, %v814_v43 }
 0x442   :  { %v783_v44 = vpop.trf.xlu0 }
 0x443   :  { %832 = vst.msk [vmem:[%s1320_s8 + $0x40] sm:$0xff] %vm823_vm0, %v783_v44 }
 0x444   :  { %v815_v45 = vpop.trf.xlu1 }
 0x445   :  { %848 = vst.msk [vmem:[%s1320_s8 + $0xc0] sm:$0xff] %vm823_vm0, %v815_v45 }
 0x446   :  { %v784_v46 = vpop.trf.xlu0 }
 0x447   :  { %833 = vst.msk [vmem:[%s1320_s8 + $0x48] sm:$0xff] %vm823_vm0, %v784_v46 }
 0x448   :  { %v816_v47 = vpop.trf.xlu1 }
 0x449   :  { %849 = vst.msk [vmem:[%s1320_s8 + $0xc8] sm:$0xff] %vm823_vm0, %v816_v47 }
 0x44a   :  { %v785_v48 = vpop.trf.xlu0 }
 0x44b   :  { %834 = vst.msk [vmem:[%s1320_s8 + $0x50] sm:$0xff] %vm823_vm0, %v785_v48 }
 0x44c   :  { %v817_v49 = vpop.trf.xlu1 }
 0x44d   :  { %850 = vst.msk [vmem:[%s1320_s8 + $0xd0] sm:$0xff] %vm823_vm0, %v817_v49 }
 0x44e   :  { %v786_v50 = vpop.trf.xlu0 }
 0x44f   :  { %835 = vst.msk [vmem:[%s1320_s8 + $0x58] sm:$0xff] %vm823_vm0, %v786_v50 }
 0x450   :  { %v818_v51 = vpop.trf.xlu1 }
 0x451   :  { %851 = vst.msk [vmem:[%s1320_s8 + $0xd8] sm:$0xff] %vm823_vm0, %v818_v51 }
 0x452   :  { %v787_v52 = vpop.trf.xlu0 }
 0x453   :  { %836 = vst.msk [vmem:[%s1320_s8 + $0x60] sm:$0xff] %vm823_vm0, %v787_v52 }
 0x454   :  { %v819_v53 = vpop.trf.xlu1 }
 0x455   :  { %852 = vst.msk [vmem:[%s1320_s8 + $0xe0] sm:$0xff] %vm823_vm0, %v819_v53 }
 0x456   :  { %v788_v54 = vpop.trf.xlu0 }
 0x457   :  { %837 = vst.msk [vmem:[%s1320_s8 + $0x68] sm:$0xff] %vm823_vm0, %v788_v54 }
 0x458   :  { %v820_v55 = vpop.trf.xlu1 }
 0x459   :  { %853 = vst.msk [vmem:[%s1320_s8 + $0xe8] sm:$0xff] %vm823_vm0, %v820_v55 }
 0x45a   :  { %v789_v56 = vpop.trf.xlu0 }
 0x45b   :  { %838 = vst.msk [vmem:[%s1320_s8 + $0x70] sm:$0xff] %vm823_vm0, %v789_v56 }
 0x45c   :  { %v821_v57 = vpop.trf.xlu1 }
 0x45d   :  { %854 = vst.msk [vmem:[%s1320_s8 + $0xf0] sm:$0xff] %vm823_vm0, %v821_v57 }
 0x45e   :  { %v790_v58 = vpop.trf.xlu0 }
 0x45f   :  { %839 = vst.msk [vmem:[%s1320_s8 + $0x78] sm:$0xff] %vm823_vm0, %v790_v58 }
 0x460   :  { %v822_v59 = vpop.trf.xlu1 }
 0x461   :  { %855 = vst.msk [vmem:[%s1320_s8 + $0xf8] sm:$0xff] %vm823_vm0, %v822_v59 }

</bundles_post_ra>
